<compile_context>
chip_gen: v6e
topology: v6e:2x2x1
jax: 0.10.0
libtpu: 0.0.40
codegen_flags: <defaults>
</compile_context>

<pallas_src>
import jax
import jax.numpy as jnp
from jax.experimental import pallas as pl
from jax.experimental.pallas import tpu as pltpu


# ----------------------------------------------------------------------------
# Kernel: one invocation, everything resident in VMEM.
# ----------------------------------------------------------------------------
def head_kernel(x_ref, w12_ref, w3_ref, w4_ref, bias_ref, o_ref):
    BT, _ = x_ref.shape
    M2p = w12_ref.shape[1]
    M1p = w3_ref.shape[1]
    B, OUTp = o_ref.shape
    T = BT // B
    cdt = w12_ref.dtype                     # matmul operand dtype (bf16 or f32)

    # bf16 cast of the activation happens in-kernel (no wrapper HBM round-trip)
    x = x_ref[...].astype(cdt)                                       # (BT, D)

    # fused fc1·fc2 (reference has no ReLU between fc1 and fc2), then ReLU
    h2 = jnp.dot(x, w12_ref[...], preferred_element_type=jnp.float32)
    h2 = jnp.maximum(h2 + bias_ref[:, :M2p], 0.0)                    # (BT, M2p) f32

    # fc3 + ReLU
    h3 = jnp.dot(h2.astype(cdt), w3_ref[...],
                 preferred_element_type=jnp.float32)
    h3 = jnp.maximum(h3 + bias_ref[:, M2p:M2p + M1p], 0.0)           # (BT, M1p) f32

    # Mean over T: 1/T is folded into w4 at prep time, so this is a plain sum.
    # (T == 8 here keeps the reshape layout-friendly; at very different T a
    #  matmul-based group reduction would avoid the reshape.)
    m = jnp.sum(h3.reshape(B, T, M1p), axis=1)                       # (B, M1p) f32

    # fc4 over all batch rows at once
    out = jnp.dot(m.astype(cdt), w4_ref[...],
                  preferred_element_type=jnp.float32)
    o_ref[...] = (out + bias_ref[:, M2p + M1p:]).astype(o_ref.dtype)  # (B, OUTp)


# ----------------------------------------------------------------------------
# One-time parameter preparation (hoisted out of the per-call path).
# ----------------------------------------------------------------------------
def _pad_to(a, shape):
    return jnp.pad(a, [(0, s - d) for d, s in zip(a.shape, shape)])


def prepare_params(params, T, compute_dtype=jnp.bfloat16):
    """Fuse fc1·fc2, fold 1/T into fc4, pad feature dims to 128 and cast
    matmul operands to `compute_dtype`. Run once; reuse for every forward."""
    w1, b1, w2, b2, w3, b3, w4, b4 = params
    D, M1 = w1.shape
    M2 = w2.shape[1]
    OUT = w4.shape[1]
    rup = lambda n: ((n + 127) // 128) * 128
    M1p, M2p, OUTp = rup(M1), rup(M2), rup(OUT)

    # fc1·fc2 fusion: (x @ w1 + b1) @ w2 + b2 == x @ (w1 @ w2) + (b1 @ w2 + b2)
    w12 = w1 @ w2                                                     # (D, M2)
    b12 = b1 @ w2 + b2                                                # (1, M2)
    # fold the 1/T of the T-mean into fc4's weight (bias unaffected)
    w4s = w4 / float(T)

    w12p = _pad_to(w12, (D, M2p)).astype(compute_dtype)               # K=D stays unpadded
    w3p = _pad_to(w3, (M2p, M1p)).astype(compute_dtype)
    w4p = _pad_to(w4s, (M1p, OUTp)).astype(compute_dtype)

    # one lane-dense f32 bias slab: [b12 | b3 | b4]  -> single DMA
    biases = jnp.concatenate(
        [_pad_to(b12, (1, M2p)), _pad_to(b3, (1, M1p)), _pad_to(b4, (1, OUTp))],
        axis=1).astype(jnp.float32)                                   # (1, M2p+M1p+OUTp)

    meta = {"OUT": OUT, "OUTp": OUTp, "T": T}
    return (w12p, w3p, w4p, biases), meta


# ----------------------------------------------------------------------------
# Per-call forward: reshape + one gridless pallas_call + output slice.
# ----------------------------------------------------------------------------
def head_forward(x, prepared, meta):
    """x: (B, T, D) float32 -> (B, OUT) float32."""
    w12p, w3p, w4p, biases = prepared
    B, T, D = x.shape
    x2 = x.reshape(B * T, D)       # contiguous row-major reshape, no pad/cast

    vmem = pl.BlockSpec(memory_space=pltpu.MemorySpace.VMEM)
    out = pl.pallas_call(
        head_kernel,
        out_shape=jax.ShapeDtypeStruct((B, meta["OUTp"]), jnp.float32),
        in_specs=[vmem] * 5,
        out_specs=vmem,
    )(x2, w12p, w3p, w4p, biases)
    return out[:, :meta["OUT"]]


# ----------------------------------------------------------------------------
# Reference / init (PyTorch-equivalent semantics; weights stored (in, out)).
# ----------------------------------------------------------------------------
def kaiming_normal(key, fan_in, fan_out):
    # kaiming_normal_(mode='fan_in', nonlinearity='leaky_relu', a=0) -> gain=sqrt(2)
    std = jnp.sqrt(2.0 / fan_in)
    return jax.random.normal(key, (fan_in, fan_out), jnp.float32) * std


def init_params(key, input_dim, output_dim):
    m1 = input_dim // 3
    m2 = input_dim * 4
    k1, k2, k3, k4 = jax.random.split(key, 4)
    w1 = kaiming_normal(k1, input_dim, m1)
    w2 = kaiming_normal(k2, m1, m2)
    w3 = kaiming_normal(k3, m2, m1)
    w4 = kaiming_normal(k4, m1, output_dim)
    b1 = jnp.zeros((1, m1), jnp.float32)
    b2 = jnp.zeros((1, m2), jnp.float32)
    b3 = jnp.zeros((1, m1), jnp.float32)
    b4 = jnp.zeros((1, output_dim), jnp.float32)
    return (w1, b1, w2, b2, w3, b3, w4, b4)


def reference_forward(x, params):
    w1, b1, w2, b2, w3, b3, w4, b4 = params
    h = x @ w1 + b1
    h = jax.nn.relu(h @ w2 + b2)
    h = jax.nn.relu(h @ w3 + b3)
    h = jnp.mean(h, axis=1)
    # dropout(p=0.0) is identity
    return h @ w4 + b4


if __name__ == "__main__":
    B, T, INPUT_DIM, OUTPUT_DIM = 2, 8, 48, 8   # middle dims: 16 and 192

    key = jax.random.PRNGKey(0)
    kx, kp = jax.random.split(key)
    x = jax.random.normal(kx, (B, T, INPUT_DIM), jnp.float32)
    params = init_params(kp, INPUT_DIM, OUTPUT_DIM)

    ref = reference_forward(x, params)

    # f32-operand path: differs from the reference only by f32 reassociation
    # (fc1·fc2 fused offline, 1/T folded into w4).
    prep_f32, meta = prepare_params(params, T, compute_dtype=jnp.float32)
    out_f32 = jax.block_until_ready(head_forward(x, prep_f32, meta))
    assert out_f32.shape == (B, OUTPUT_DIM)
    assert jnp.allclose(out_f32, ref, atol=1e-4, rtol=1e-4), "f32 mismatch"

    # bf16-operand production path: f32 accumulation / bias / ReLU / reduction.
    prep_bf16, meta = prepare_params(params, T, compute_dtype=jnp.bfloat16)
    out_bf16 = jax.block_until_ready(head_forward(x, prep_bf16, meta))
    assert out_bf16.shape == (B, OUTPUT_DIM)
    assert jnp.allclose(out_bf16, ref, atol=1e-1, rtol=1e-1), "bf16 mismatch"

    print("KERNEL_OK")
</pallas_src>

<mosaic_0001>
module attributes {stable_mosaic.version = 11 : i64} {
  func.func @head_kernel(%arg0: memref<16x48xf32, #tpu.memory_space<vmem>>, %arg1: memref<48x256xf32, #tpu.memory_space<vmem>>, %arg2: memref<256x128xf32, #tpu.memory_space<vmem>>, %arg3: memref<128x128xf32, #tpu.memory_space<vmem>>, %arg4: memref<1x512xf32, #tpu.memory_space<vmem>>, %arg5: memref<2x128xf32, #tpu.memory_space<vmem>>) attributes {dimension_semantics = [], scalar_prefetch = 0 : i64, scratch_operands = 0 : i64, tpu.core_type = #tpu.core_type<tc>} {
    %c0 = arith.constant 0 : index
    %c0_0 = arith.constant 0 : index
    %0 = vector.load %arg0[%c0, %c0_0] : memref<16x48xf32, #tpu.memory_space<vmem>>, vector<16x48xf32>
    %c0_1 = arith.constant 0 : index
    %c0_2 = arith.constant 0 : index
    %1 = vector.load %arg1[%c0_1, %c0_2] : memref<48x256xf32, #tpu.memory_space<vmem>>, vector<48x256xf32>
    %cst = arith.constant dense<0.000000e+00> : vector<16x256xf32>
    %2 = tpu.matmul %0, %1, %cst {dimension_numbers = #tpu.dot_dimension_numbers<[1], [0], [0], [1], [0, 0, 1, 1], [], []>} : vector<16x48xf32>, vector<48x256xf32>, vector<16x256xf32> -> vector<16x256xf32>
    %c0_3 = arith.constant 0 : index
    %c0_4 = arith.constant 0 : index
    %3 = vector.load %arg4[%c0_3, %c0_4] : memref<1x512xf32, #tpu.memory_space<vmem>>, vector<1x256xf32>
    %4 = vector.broadcast %3 : vector<1x256xf32> to vector<16x256xf32>
    %5 = arith.addf %2, %4 : vector<16x256xf32>
    %cst_5 = arith.constant 0.000000e+00 : f32
    %6 = vector.broadcast %cst_5 : f32 to vector<16x256xf32>
    %7 = arith.maximumf %5, %6 : vector<16x256xf32>
    %c0_6 = arith.constant 0 : index
    %c0_7 = arith.constant 0 : index
    %8 = vector.load %arg2[%c0_6, %c0_7] : memref<256x128xf32, #tpu.memory_space<vmem>>, vector<256x128xf32>
    %cst_8 = arith.constant dense<0.000000e+00> : vector<16x128xf32>
    %9 = tpu.matmul %7, %8, %cst_8 {dimension_numbers = #tpu.dot_dimension_numbers<[1], [0], [0], [1], [0, 0, 1, 1], [], []>} : vector<16x256xf32>, vector<256x128xf32>, vector<16x128xf32> -> vector<16x128xf32>
    %c0_9 = arith.constant 0 : index
    %c256 = arith.constant 256 : index
    %10 = vector.load %arg4[%c0_9, %c256] : memref<1x512xf32, #tpu.memory_space<vmem>>, vector<1x128xf32>
    %11 = vector.broadcast %10 : vector<1x128xf32> to vector<16x128xf32>
    %12 = arith.addf %9, %11 : vector<16x128xf32>
    %cst_10 = arith.constant 0.000000e+00 : f32
    %13 = vector.broadcast %cst_10 : f32 to vector<16x128xf32>
    %14 = arith.maximumf %12, %13 : vector<16x128xf32>
    %15 = vector.shape_cast %14 : vector<16x128xf32> to vector<2x8x128xf32>
    %cst_11 = arith.constant dense<0.000000e+00> : vector<2x128xf32>
    %16 = vector.multi_reduction <add>, %15, %cst_11 [1] : vector<2x8x128xf32> to vector<2x128xf32>
    %c0_12 = arith.constant 0 : index
    %c0_13 = arith.constant 0 : index
    %17 = vector.load %arg3[%c0_12, %c0_13] : memref<128x128xf32, #tpu.memory_space<vmem>>, vector<128x128xf32>
    %cst_14 = arith.constant dense<0.000000e+00> : vector<2x128xf32>
    %18 = tpu.matmul %16, %17, %cst_14 {dimension_numbers = #tpu.dot_dimension_numbers<[1], [0], [0], [1], [0, 0, 1, 1], [], []>} : vector<2x128xf32>, vector<128x128xf32>, vector<2x128xf32> -> vector<2x128xf32>
    %c0_15 = arith.constant 0 : index
    %c384 = arith.constant 384 : index
    %19 = vector.load %arg4[%c0_15, %c384] : memref<1x512xf32, #tpu.memory_space<vmem>>, vector<1x128xf32>
    %20 = vector.broadcast %19 : vector<1x128xf32> to vector<2x128xf32>
    %21 = arith.addf %18, %20 : vector<2x128xf32>
    %c0_16 = arith.constant 0 : index
    %c0_17 = arith.constant 0 : index
    %22 = vector.load %arg5[%c0_16, %c0_17] : memref<2x128xf32, #tpu.memory_space<vmem>>, vector<2x128xf32>
    tpu.vector_store %arg5[%c0_16, %c0_17], %21 {strides = array<i32>} : memref<2x128xf32, #tpu.memory_space<vmem>>, vector<2x128xf32>,
    return
  }
}

</mosaic_0001>

<bundles_post_ra>
// kernel: tpu_custom_call.1
= control target key start
LH: loop header
LB: loop body
LE: loop exit
PB: predicated region body
PF: predicated region fallthrough
CT: control target
= control target key end

     0   :  { %10 = vsyncpa [#allocation3], 0  ;;  %s733_s0 = inlined_call_operand.hbm [shape: f32[16,48], index: 0, kind: input, shape index: {}]   ;;  %s734_s1 = inlined_call_operand.hbm [shape: f32[48,256], index: 1, kind: input, shape index: {}]   ;;  %s735_s2 = inlined_call_operand.hbm [shape: f32[256,128], index: 2, kind: input, shape index: {}]   ;;  %s736_s3 = inlined_call_operand.hbm [shape: f32[128,128], index: 3, kind: input, shape index: {}]   ;;  %s737_s4 = inlined_call_operand.vmem [shape: f32[1,512], index: 4, kind: input, shape index: {}]   ;;  %s738_s5 = inlined_call_operand.hbm [shape: f32[2,128], index: 5, kind: output, shape index: {}]  }
   0x1   :  { %11 = vsyncpa [#allocation6], 0 }
   0x2   :  { %12 = vsyncpa [#allocation9], 0 }
   0x3   :  { %13 = vsyncpa [#allocation4], 0  ;;  %s647_s18 = smov [#allocation5]  }
   0x4   :  { %s31_s19 = sshll.u32 %s647_s18, 4  ;;  %s32_s19 = int_to_ptr.vmem [resolvable:$true] %s31_s19 }
   0x5   :  { %s547_s20 = scalar_lea.vmem %s32_s19, 1536  ;;  %p552_p1 = scmp.lt.s32.totalorder %s32_s19, %s32_s19 }
   0x6   :  { %p548_p0 = scmp.ne.s32.totalorder %s32_s19, %s547_s20  ;;  %p553_p2 = scmp.lt.s32.totalorder %s547_s20, %s547_s20 }
   0x8   :  { %p554_p3 = por %p553_p2, %p552_p1 }
   0xa   :  { %p555_p4 = pnand %p554_p3, %p548_p0 }
   0xc   :  { %558 = shalt.err (!%p555_p4)
}
   0xd   :  { %s648_s21 = smov 256   ;;  %s649_s22 = smov 16  }
   0xe   :  { %37 = dma.hbm_to_vmem [thread:$0]  %s734_s1, 1536, %s32_s19, [#allocation6], %s648_s21, %s648_s21, %s649_s22  }
   0xf   :  { %s650_s25 = smov [#allocation2]  }
  0x10   :  { %s19_s26 = sshll.u32 %s650_s25, 4  ;;  %s20_s26 = int_to_ptr.vmem [resolvable:$true] %s19_s26 }
  0x11   :  { %s567_s27 = scalar_lea.vmem %s20_s26, 256  ;;  %p572_p6 = scmp.lt.s32.totalorder %s20_s26, %s20_s26 }
  0x12   :  { %p568_p5 = scmp.ne.s32.totalorder %s20_s26, %s567_s27  ;;  %p573_p7 = scmp.lt.s32.totalorder %s567_s27, %s567_s27 }
  0x14   :  { %p574_p8 = por %p573_p7, %p572_p6 }
  0x16   :  { %p575_p9 = pnand %p574_p8, %p568_p5 }
  0x18   :  { %578 = shalt.err (!%p575_p9)
}
  0x19   :  { %s651_s28 = smov 128   ;;  %s652_s29 = smov 8  }
  0x1a   :  { %25 = dma.hbm_to_vmem [thread:$0]  %s733_s0, 256, %s20_s26, [#allocation3], %s651_s28, %s651_s28, %s652_s29  }
  0x1b   :  { %s653_s7 = smov [#allocation7]   ;;  %s654_s9 = smov [#allocation8]  }
  0x1c   :  { %s43_s8 = sshll.u32 %s653_s7, 4  ;;  %s55_s1 = sshll.u32 %s654_s9, 4  ;;  %s44_s8 = int_to_ptr.vmem [resolvable:$true] %s43_s8  ;;  %s56_s1 = int_to_ptr.vmem [resolvable:$true] %s55_s1 }
  0x1d   :  { %s587_s10 = scalar_lea.vmem %s44_s8, 4096  ;;  %p592_p11 = scmp.lt.s32.totalorder %s44_s8, %s44_s8 }
  0x1e   :  { %p588_p10 = scmp.ne.s32.totalorder %s44_s8, %s587_s10  ;;  %p593_p12 = scmp.lt.s32.totalorder %s587_s10, %s587_s10 }
  0x20   :  { %p594_p13 = por %p593_p12, %p592_p11 }
  0x22   :  { %p595_p0 = pnand %p594_p13, %p588_p10 }
  0x24   :  { %598 = shalt.err (!%p595_p0)
}
  0x25   :  { %49 = dma.hbm_to_vmem [thread:$0]  %s735_s2, 4096, %s44_s8, [#allocation6], %s651_s28, %s651_s28, %s652_s29  }
  0x26   :  { %s607_s13 = scalar_lea.vmem %s56_s1, 2048  ;;  %p612_p2 = scmp.lt.s32.totalorder %s56_s1, %s56_s1 }
  0x27   :  { %p608_p1 = scmp.ne.s32.totalorder %s56_s1, %s607_s13  ;;  %p613_p3 = scmp.lt.s32.totalorder %s607_s13, %s607_s13 }
  0x29   :  { %p614_p4 = por %p613_p3, %p612_p2 }
  0x2b   :  { %p615_p5 = pnand %p614_p4, %p608_p1 }
  0x2d   :  { %618 = shalt.err (!%p615_p5)
}
  0x2e   :  { %61 = dma.hbm_to_vmem [thread:$0]  %s736_s3, 2048, %s56_s1, [#allocation9], %s651_s28, %s651_s28, %s652_s29  }
  0x2f   :  { %639 = dma.done.wait [#allocation3], 256  }
  0x30   :  { %640 = vsyncadd [#allocation3], 4294967040 }
  0x31   :  { %641 = dma.done.wait [#allocation6], 5632  }
  0x32   :  { %642 = vsyncadd [#allocation6], 4294961664 }
  0x33   :  { %643 = dma.done.wait [#allocation9], 2048  }
  0x34   :  { %644 = vsyncadd [#allocation9], 4294965248  ;;  %v655_v0 = vmov 0.0   ;;  %v89_v1 = vld [vmem:[#allocation5 + $0x58] sm:$0xff]  ;;  %v88_v2 = vld [vmem:[#allocation5 + $0x50] sm:$0xff]  ;;  %vm102_vm0 = vcmask 392192   ;;  %v92_v50 = vlaneseq }
  0x35   :  { %173 = vmatprep.mubr.f32.mxu0 %v655_v0  ;;  %v87_v3 = vld [vmem:[#allocation5 + $0x48] sm:$0xff]  ;;  %129 = vmatprep.subr.mxu0 %v89_v1  ;;  %v86_v4 = vld [vmem:[#allocation5 + $0x40] sm:$0xff]  ;;  %v85_v5 = vld [vmem:[#allocation5 + $0x38] sm:$0xff]  ;;  %vm656_vm1 = vmmov 0   ;;  %vm343_vm2 = vcmask 1041409   ;;  %s657_s19 = smov [#allocation10]  }
  0x36   :  { %130 = vmatpush1.msra.mxu0 %v88_v2  ;;  %v84_v6 = vld [vmem:[#allocation5 + $0x30] sm:$0xff]  ;;  %v83_v7 = vld [vmem:[#allocation5 + $0x28] sm:$0xff]  ;;  %v82_v8 = vld [vmem:[#allocation5 + $0x20] sm:$0xff]  ;;  %v93_v51 = vshrl.u32 %v92_v50, 7  ;;  %s423_s20 = sshll.u32 %s657_s19, 4  ;;  %s424_s20 = int_to_ptr.vmem [resolvable:$true] %s423_s20 }
  0x37   :  { %131 = vmatprep.subr.mxu0 %v87_v3  ;;  %v221_v9 = vld [vmem:[#allocation7 + $0xf8] sm:$0xff]  ;;  %v220_v11 = vld [vmem:[#allocation7 + $0xf0] sm:$0xff]  ;;  %v219_v14 = vld [vmem:[#allocation7 + $0xe8] sm:$0xff]  ;;  %s619_s21 = scalar_lea.vmem %s424_s20, 32  ;;  %p624_p7 = scmp.lt.s32.totalorder %s424_s20, %s424_s20 }
  0x38   :  { %132 = vmatpush1.msra.mxu0 %v86_v4  ;;  %438 = vmatprep.subr.mxu1 %v221_v9  ;;  %v205_v10 = vld [vmem:[#allocation7 + $0x78] sm:$0xff]  ;;  %v204_v12 = vld [vmem:[#allocation7 + $0x70] sm:$0xff]  ;;  %v203_v16 = vld [vmem:[#allocation7 + $0x68] sm:$0xff]  ;;  %v94_v52 = vsub.s32 0, %v93_v51  ;;  %v98_v54 = vsub.s32 1, %v93_v51  ;;  %p620_p6 = scmp.ne.s32.totalorder %s424_s20, %s619_s21  ;;  %p625_p8 = scmp.lt.s32.totalorder %s619_s21, %s619_s21 }
  0x39   :  { %133 = vmatprep.subr.mxu0 %v85_v5  ;;  %v81_v13 = vld [vmem:[#allocation5 + $0x18] sm:$0xff]  ;;  %439 = vmatpush3.msra.mxu1 %v205_v10  ;;  %v80_v15 = vld [vmem:[#allocation5 + $0x10] sm:$0xff]  ;;  %v79_v17 = vld [vmem:[#allocation5 + $0x8] sm:$0xff] }
  0x3a   :  { %134 = vmatpush1.msra.mxu0 %v84_v6  ;;  %440 = vmatprep.subr.mxu1 %v220_v11  ;;  %v218_v18 = vld [vmem:[#allocation7 + $0xe0] sm:$0xff]  ;;  %v76_v21 = vld [vmem:[#allocation2] sm:$0xff]  ;;  %v217_v22 = vld [vmem:[#allocation7 + $0xd8] sm:$0xff]  ;;  %p626_p9 = por %p625_p8, %p624_p7 }
  0x3b   :  { %135 = vmatprep.subr.mxu0 %v83_v7  ;;  %441 = vmatpush3.msra.mxu1 %v204_v12  ;;  %v78_v19 = vld [vmem:[#allocation5] sm:$0xff]  ;;  %v201_v23 = vld [vmem:[#allocation7 + $0x58] sm:$0xff]  ;;  %v216_v24 = vld [vmem:[#allocation7 + $0xd0] sm:$0xff] }
  0x3c   :  { %136 = vmatpush1.msra.mxu0 %v82_v8  ;;  %442 = vmatprep.subr.mxu1 %v219_v14  ;;  %v202_v20 = vld [vmem:[#allocation7 + $0x60] sm:$0xff]  ;;  %v200_v25 = vld [vmem:[#allocation7 + $0x50] sm:$0xff]  ;;  %v77_v26 = vld [vmem:[#allocation2 + $0x8] sm:$0xff]  ;;  %p627_p10 = pnand %p626_p9, %p620_p6 }
  0x3d   :  { %137 = vmatprep.subr.mxu0 %v81_v13  ;;  %443 = vmatpush3.msra.mxu1 %v203_v16  ;;  %v215_v27 = vld [vmem:[#allocation7 + $0xc8] sm:$0xff]  ;;  %v214_v29 = vld [vmem:[#allocation7 + $0xc0] sm:$0xff]  ;;  %v213_v31 = vld [vmem:[#allocation7 + $0xb8] sm:$0xff] }
  0x3e   :  { %138 = vmatpush1.msra.mxu0 %v80_v15  ;;  %444 = vmatprep.subr.mxu1 %v218_v18  ;;  %v199_v28 = vld [vmem:[#allocation7 + $0x48] sm:$0xff]  ;;  %v198_v30 = vld [vmem:[#allocation7 + $0x40] sm:$0xff]  ;;  %v197_v32 = vld [vmem:[#allocation7 + $0x38] sm:$0xff] }
  0x3f   :  { %139 = vmatprep.subr.mxu0 %v79_v17  ;;  %445 = vmatpush3.msra.mxu1 %v202_v20  ;;  %v212_v33 = vld [vmem:[#allocation7 + $0xb0] sm:$0xff]  ;;  %v211_v35 = vld [vmem:[#allocation7 + $0xa8] sm:$0xff]  ;;  %v210_v37 = vld [vmem:[#allocation7 + $0xa0] sm:$0xff] }
  0x40   :  { %140 = vmatpush1.msra.mxu0 %v78_v19  ;;  %446 = vmatprep.subr.mxu1 %v217_v22  ;;  %v196_v34 = vld [vmem:[#allocation7 + $0x30] sm:$0xff]  ;;  %v195_v36 = vld [vmem:[#allocation7 + $0x28] sm:$0xff]  ;;  %v194_v38 = vld [vmem:[#allocation7 + $0x20] sm:$0xff] }
  0x41   :  { %434 = vmatmul.mubr.msk.f32.vlgmr.msra.gmra.mxu0 %vm102_vm0, %v76_v21  ;;  %447 = vmatpush3.msra.mxu1 %v201_v23  ;;  %v209_v39 = vld [vmem:[#allocation7 + $0x98] sm:$0xff]  ;;  %v208_v41 = vld [vmem:[#allocation7 + $0x90] sm:$0xff]  ;;  %v207_v43 = vld [vmem:[#allocation7 + $0x88] sm:$0xff] }
  0x42   :  { %179 = vmatprep.mubr.f32.mxu0 %v655_v0  ;;  %448 = vmatprep.subr.mxu1 %v216_v24  ;;  %v193_v40 = vld [vmem:[#allocation7 + $0x18] sm:$0xff]  ;;  %v192_v42 = vld [vmem:[#allocation7 + $0x10] sm:$0xff]  ;;  %v191_v44 = vld [vmem:[#allocation7 + $0x8] sm:$0xff] }
  0x43   :  { %493 = vmatprep.subr.mxu0 %v655_v0  ;;  %449 = vmatpush3.msra.mxu1 %v200_v25  ;;  %v206_v45 = vld [vmem:[#allocation7 + $0x80] sm:$0xff]  ;;  %v333_v47 = vld [vmem:[#allocation8 + $0x78] sm:$0xff]  ;;  %v332_v48 = vld [vmem:[#allocation8 + $0x70] sm:$0xff] }
  0x44   :  { %450 = vmatprep.subr.mxu1 %v215_v27  ;;  %v190_v46 = vld [vmem:[#allocation7] sm:$0xff]  ;;  %494 = vmatpush3.msra.mxu0 %v333_v47  ;;  %v331_v49 = vld [vmem:[#allocation8 + $0x68] sm:$0xff]  ;;  %v90_v53 = vld [vmem:[%s737_s4] sm:$0x3] }
  0x45   :  { %435 = vmatmul.mubr.msk.f32.gmra.mxu0 %vm102_vm0, %v77_v26  ;;  %451 = vmatpush3.msra.mxu1 %v199_v28  ;;  %v95_v55 = vrot.slane %v90_v53, %v94_v52  ;;  %v99_v56 = vrot.slane %v90_v53, %v98_v54  ;;  %v330_v6 = vld [vmem:[#allocation8 + $0x60] sm:$0xff]  ;;  %v329_v7 = vld [vmem:[#allocation8 + $0x58] sm:$0xff]  ;;  %v328_v8 = vld [vmem:[#allocation8 + $0x50] sm:$0xff] }
  0x46   :  { %452 = vmatprep.subr.mxu1 %v214_v29  ;;  %495 = vmatprep.subr.mxu0 %v655_v0  ;;  %v327_v9 = vld [vmem:[#allocation8 + $0x48] sm:$0xff]  ;;  %v326_v10 = vld [vmem:[#allocation8 + $0x40] sm:$0xff]  ;;  %v325_v11 = vld [vmem:[#allocation8 + $0x38] sm:$0xff] }
  0x47   :  { %453 = vmatpush3.msra.mxu1 %v198_v30  ;;  %496 = vmatpush3.msra.mxu0 %v332_v48  ;;  %v324_v12 = vld [vmem:[#allocation8 + $0x30] sm:$0xff]  ;;  %v323_v13 = vld [vmem:[#allocation8 + $0x28] sm:$0xff]  ;;  %v322_v14 = vld [vmem:[#allocation8 + $0x20] sm:$0xff] }
  0x48   :  { %454 = vmatprep.subr.mxu1 %v213_v31  ;;  %497 = vmatprep.subr.mxu0 %v655_v0  ;;  %v321_v15 = vld [vmem:[#allocation8 + $0x18] sm:$0xff]  ;;  %v320_v16 = vld [vmem:[#allocation8 + $0x10] sm:$0xff]  ;;  %v319_v17 = vld [vmem:[#allocation8 + $0x8] sm:$0xff] }
  0x49   :  { %455 = vmatpush3.msra.mxu1 %v197_v32  ;;  %498 = vmatpush3.msra.mxu0 %v331_v49  ;;  %v318_v18 = vld [vmem:[#allocation8] sm:$0xff]  ;;  %v436_v20 = vld [vmem:[%s737_s4 + $0x2] ss:$0 sm:$0xff] }
  0x4a   :  { %456 = vmatprep.subr.mxu1 %v212_v33  ;;  %499 = vmatprep.subr.mxu0 %v655_v0 }
  0x4b   :  { %457 = vmatpush3.msra.mxu1 %v196_v34  ;;  %500 = vmatpush3.msra.mxu0 %v330_v6 }
  0x4c   :  { %458 = vmatprep.subr.mxu1 %v211_v35  ;;  %501 = vmatprep.subr.mxu0 %v655_v0 }
  0x4d   :  { %459 = vmatpush3.msra.mxu1 %v195_v36  ;;  %502 = vmatpush3.msra.mxu0 %v329_v7 }
  0x4e   :  { %460 = vmatprep.subr.mxu1 %v210_v37  ;;  %503 = vmatprep.subr.mxu0 %v655_v0 }
  0x4f   :  { %461 = vmatpush3.msra.mxu1 %v194_v38  ;;  %504 = vmatpush3.msra.mxu0 %v328_v8 }
  0x50   :  { %462 = vmatprep.subr.mxu1 %v209_v39  ;;  %505 = vmatprep.subr.mxu0 %v655_v0 }
  0x51   :  { %463 = vmatpush3.msra.mxu1 %v193_v40  ;;  %506 = vmatpush3.msra.mxu0 %v327_v9 }
  0x52   :  { %464 = vmatprep.subr.mxu1 %v208_v41  ;;  %507 = vmatprep.subr.mxu0 %v655_v0 }
  0x53   :  { %465 = vmatpush3.msra.mxu1 %v192_v42  ;;  %508 = vmatpush3.msra.mxu0 %v326_v10  ;;  %v437_v42 = vld [vmem:[%s737_s4 + $0x3] ss:$0 sm:$0xff] }
  0x54   :  { %466 = vmatprep.subr.mxu1 %v207_v43  ;;  %509 = vmatprep.subr.mxu0 %v655_v0 }
  0x55   :  { %467 = vmatpush3.msra.mxu1 %v191_v44  ;;  %510 = vmatpush3.msra.mxu0 %v325_v11 }
  0x56   :  { %468 = vmatprep.subr.mxu1 %v206_v45  ;;  %511 = vmatprep.subr.mxu0 %v655_v0 }
  0x57   :  { %469 = vmatpush3.msra.mxu1 %v190_v46  ;;  %512 = vmatpush3.msra.mxu0 %v324_v12 }
  0x58   :  { %513 = vmatprep.subr.mxu0 %v655_v0  ;;  %525 = vmatprep.mubr.msk.f32.mxu0 %vm656_vm1, %v655_v0 }
  0x59   :  { %514 = vmatpush3.msra.mxu0 %v323_v13 }
  0x5a   :  { %515 = vmatprep.subr.mxu0 %v655_v0 }
  0x5b   :  { %516 = vmatpush3.msra.mxu0 %v322_v14 }
  0x5c   :  { %517 = vmatprep.subr.mxu0 %v655_v0 }
  0x5d   :  { %518 = vmatpush3.msra.mxu0 %v321_v15 }
  0x5e   :  { %519 = vmatprep.subr.mxu0 %v655_v0 }
  0x5f   :  { %520 = vmatpush3.msra.mxu0 %v320_v16 }
  0x60   :  { %521 = vmatprep.subr.mxu0 %v655_v0 }
  0x61   :  { %522 = vmatpush3.msra.mxu0 %v319_v17 }
  0x62   :  { %523 = vmatprep.subr.mxu0 %v655_v0 }
  0x63   :  { %524 = vmatpush3.msra.mxu0 %v318_v18 }
 0x101   :  { %v175_v57 = vpop.f32.mrf.mxu0 }
 0x102   :  { %v176_v58 = vadd.f32 %v175_v57, %v95_v55 }
 0x103   :  { %v177_v59 = vpop.f32.mrf.mxu0 }
 0x104   :  { %v178_v60 = vadd.f32 %v177_v59, %v99_v56  ;;  %v186_v63 = vmax.f32 %v176_v58, 0.0 }
 0x105   :  { %v181_v61 = vpop.f32.mrf.mxu0 }
 0x106   :  { %v187_v62 = vmax.f32 %v178_v60, 0.0  ;;  %v182_v1 = vadd.f32 %v181_v61, %v95_v55 }
 0x107   :  { %v183_v2 = vpop.f32.mrf.mxu0 }
 0x108   :  { %v184_v3 = vadd.f32 %v183_v2, %v99_v56  ;;  %293 = vmatprep.mubr.f32.mxu1 %v187_v62  ;;  %v188_v5 = vmax.f32 %v182_v1, 0.0 }
 0x109   :  { %294 = vmatmul.mubr.f32.vlgmr.msra.gmra.mxu1 %v186_v63 }
 0x10a   :  { %v189_v4 = vmax.f32 %v184_v3, 0.0 }
 0x10c   :  { %298 = vmatprep.mubr.f32.mxu1 %v189_v4 }
 0x10d   :  { %299 = vmatmul.mubr.f32.gmra.mxu1 %v188_v5 }
 0x1c9   :  { %v470_v19 = vpop.f32.mrf.mxu1 }
 0x1cb   :  { %v471_v21 = vpop.f32.mrf.mxu1 }
 0x1cc   :  { %v472_v22 = vadd.f32 %v471_v21, %v470_v19 }
 0x1cd   :  { %v473_v23 = vpop.f32.mrf.mxu1 }
 0x1ce   :  { %v296_v24 = vadd.f32 %v472_v22, %v436_v20 }
 0x1cf   :  { %v474_v25 = vpop.f32.mrf.mxu1 }
 0x1d0   :  { %v304_v26 = vmax.f32 %v296_v24, 0.0  ;;  %v475_v27 = vadd.f32 %v474_v25, %v473_v23 }
 0x1d2   :  { %v306_v28 = vrot.slane %v304_v26, 4  ;;  %v301_v29 = vadd.f32 %v475_v27, %v436_v20 }
 0x1d4   :  { %v307_v30 = vadd.f32 %v306_v28, %v304_v26  ;;  %v305_v31 = vmax.f32 %v301_v29, 0.0 }
 0x1d6   :  { %v308_v32 = vrot.slane %v307_v30, 2  ;;  %v312_v33 = vrot.slane %v305_v31, 4 }
 0x1d8   :  { %v309_v0 = vadd.f32 %v308_v32, %v307_v30  ;;  %v313_v34 = vadd.f32 %v312_v33, %v305_v31 }
 0x1da   :  { %v314_v35 = vrot.slane %v313_v34, 2  ;;  %v310_v36 = vrot.slane %v309_v0, 1 }
 0x1dc   :  { %v315_v37 = vadd.f32 %v314_v35, %v313_v34  ;;  %v311_v39 = vadd.f32 %v310_v36, %v309_v0 }
 0x1de   :  { %v316_v38 = vrot.slane %v315_v37, 1 }
 0x1e0   :  { %v317_v40 = vadd.f32 %v316_v38, %v315_v37 }
 0x1e2   :  { %v344_v41 = vsel %vm343_vm2, %v317_v40, %v311_v39 }
 0x1e3   :  { %526 = vmatmul.mubr.f32.vlgmr.msra.gmra.mxu0 %v344_v41 }
 0x2a3   :  { %v412_v43 = vpop.f32.mrf.mxu0 }
 0x2a4   :  { %v413_v44 = vadd.f32 %v437_v42, %v412_v43 }
 0x2a5   :  { %v527_v45 = vpop.f32.mrf.mxu0 }
 0x2a6   :  { %416 = vst [vmem:[#allocation10] sm:$0x3] %v413_v44 }
 0x2a7   :  { %630 = shalt.err (!%p627_p10)
}
 0x2a8   :  { %426 = dma.vmem_to_hbm [thread:$0]  %s424_s20, 32, %s738_s5, [#allocation4]  }
 0x2a9   :  { %645 = dma.done.wait [#allocation4], 32  }
 0x2aa   :  { %646 = vsyncadd [#allocation4], 4294967264 }
 0x2ab   :  { %430 = vsyncpa [#allocation3], 1 }
 0x2ac   :  { %431 = vsyncpa [#allocation6], 1 }
 0x2ad   :  { %432 = vsyncpa [#allocation9], 1 }
 0x2ae   :  { %433 = vsyncpa [#allocation4], 1 }

</bundles_post_ra>
